<compile_context>
chip_gen: v5e
topology: v5e:2x2
jax: 0.10.0
libtpu: 0.0.40
codegen_flags: <defaults>
</compile_context>

<pallas_src>
import functools

import jax
import jax.numpy as jnp
from jax import lax
from jax.experimental import pallas as pl
from jax.experimental.pallas import tpu as pltpu


def _mlp_kernel(x_ref, w1_ref, w2_ref, y1_ref, y2_ref, *, hidden_dim, out_dim):
    # x_ref : (TILE_M, input_dim + 1)    -- last column is ones (bias1 folded into w1)
    # w1_ref: (input_dim + 1, hidden_dim) -- W1 pre-transposed, bias1 appended as a row
    # w2_ref: (out_dim, hidden_dim + 1)   -- W2 with bias2 appended as a column
    x = x_ref[...]
    w1 = w1_ref[...]
    w2 = w2_ref[...]

    # Layer 1: native-layout MXU matmul (no in-kernel transpose); bias1 folded in.
    y1 = jnp.dot(x, w1, preferred_element_type=jnp.float32)
    y1_ref[...] = y1.astype(y1_ref.dtype)

    s1 = jax.nn.sigmoid(y1)                       # (TILE_M, hidden_dim) f32
    w2_main = w2[:, :hidden_dim]                  # (out_dim, hidden_dim)
    b2 = w2[:, hidden_dim:]                       # (out_dim, 1)

    if out_dim == 1:
        # VPU path: elementwise multiply + tiny cross-lane reduce instead of a
        # single-column MXU matmul (avoids vmatmul push + result-FIFO pop).
        z = jnp.sum(s1 * w2_main, axis=-1, keepdims=True) + b2    # (TILE_M, 1)
    else:
        # General path: contract hidden_dim natively (no materialized .T).
        z = lax.dot_general(s1, w2_main,
                            dimension_numbers=(((1,), (1,)), ((), ())),
                            preferred_element_type=jnp.float32)
        z = z + jnp.reshape(b2, (1, out_dim))
    y2_ref[...] = jax.nn.sigmoid(z).astype(y2_ref.dtype)


def model_forward(x, W1, W2, bias1, bias2, *, tile_m=512):
    """Pallas equivalent of Model.forward. Returns (y1, y2.squeeze())."""
    N, input_dim = x.shape
    hidden_dim = W1.shape[0]
    out_dim = W2.shape[0]
    f32 = jnp.float32

    def as_f32(a):
        return a if a.dtype == f32 else a.astype(f32)

    x, W1, W2, bias1, bias2 = map(as_f32, (x, W1, W2, bias1, bias2))

    # Fold biases into the weights once on the host side -> only 3 kernel inputs
    # (cuts the number of tiny per-call DMAs, removes in-kernel bias adds):
    #   w1_aug = [W1.T ; bias1]   (input_dim + 1, hidden_dim)
    #   w2_aug = [W2 | bias2]     (out_dim, hidden_dim + 1)
    w1_aug = jnp.concatenate([W1.T, bias1.reshape(1, hidden_dim)], axis=0)
    w2_aug = jnp.concatenate([W2, bias2.reshape(out_dim, 1)], axis=1)
    x_aug = jnp.concatenate([x, jnp.ones((N, 1), f32)], axis=1)   # (N, input_dim + 1)

    # Batch tiling: weights stay VMEM-resident across grid steps, the x DMA is
    # software-pipelined against compute, and "parallel" lets multi-TC chips
    # (v7x) split the batch axis across cores.
    tile = tile_m if N >= tile_m else N
    n_pad = pl.cdiv(N, tile) * tile
    if n_pad != N:
        x_aug = jnp.pad(x_aug, ((0, n_pad - N), (0, 0)))
    grid = (n_pad // tile,)

    kernel = functools.partial(_mlp_kernel, hidden_dim=hidden_dim, out_dim=out_dim)

    y1, y2 = pl.pallas_call(
        kernel,
        out_shape=(
            jax.ShapeDtypeStruct((n_pad, hidden_dim), f32),
            jax.ShapeDtypeStruct((n_pad, out_dim), f32),
        ),
        grid=grid,
        in_specs=[
            pl.BlockSpec((tile, input_dim + 1), lambda i: (i, 0)),
            pl.BlockSpec((input_dim + 1, hidden_dim), lambda i: (0, 0)),
            pl.BlockSpec((out_dim, hidden_dim + 1), lambda i: (0, 0)),
        ],
        out_specs=(
            pl.BlockSpec((tile, hidden_dim), lambda i: (i, 0)),
            pl.BlockSpec((tile, out_dim), lambda i: (i, 0)),
        ),
        compiler_params=pltpu.CompilerParams(
            dimension_semantics=("parallel",),
        ),
    )(x_aug, w1_aug, w2_aug)

    if n_pad != N:
        y1 = y1[:N]
        y2 = y2[:N]
    # torch's y2.squeeze(): out_dim == 1 -> shape (N,)
    return y1, jnp.squeeze(y2)


def _reference(x, W1, W2, bias1, bias2):
    y1 = jnp.einsum('kj,ij->ik', W1, x) + bias1
    y2 = jax.nn.sigmoid(jnp.einsum('kj,ij->ik', W2, jax.nn.sigmoid(y1)) + bias2)
    return y1, jnp.squeeze(y2)


if __name__ == "__main__":
    # Small shapes consistent with the module: batch=8, input_dim=16,
    # hidden_dim=3, out_dim=1, add_bias=False (biases are zeros).
    N, input_dim, hidden_dim, out_dim = 8, 16, 3, 1

    key = jax.random.PRNGKey(0)
    kx, kw1, kw2 = jax.random.split(key, 3)

    x = jax.random.normal(kx, (N, input_dim), dtype=jnp.float32)
    # torch.rand -> uniform [0, 1)
    W1 = jax.random.uniform(kw1, (hidden_dim, input_dim), dtype=jnp.float32)
    W2 = jax.random.uniform(kw2, (out_dim, hidden_dim), dtype=jnp.float32)
    bias1 = jnp.zeros((hidden_dim,), dtype=jnp.float32)
    bias2 = jnp.zeros((out_dim,), dtype=jnp.float32)

    y1, y2 = model_forward(x, W1, W2, bias1, bias2)
    jax.block_until_ready((y1, y2))

    y1_ref, y2_ref = _reference(x, W1, W2, bias1, bias2)
    assert y1.shape == (N, hidden_dim) and y2.shape == (N,)
    assert jnp.allclose(y1, y1_ref, atol=1e-5, rtol=1e-5)
    assert jnp.allclose(y2, y2_ref, atol=1e-5, rtol=1e-5)

    print("KERNEL_OK")
</pallas_src>

<mosaic_0001>
module attributes {stable_mosaic.version = 11 : i64} {
  func.func @_mlp_kernel(%arg0: i32, %arg1: memref<8x17xf32, #tpu.memory_space<vmem>>, %arg2: memref<17x3xf32, #tpu.memory_space<vmem>>, %arg3: memref<1x4xf32, #tpu.memory_space<vmem>>, %arg4: memref<8x3xf32, #tpu.memory_space<vmem>>, %arg5: memref<8x1xf32, #tpu.memory_space<vmem>>) attributes {dimension_semantics = [#tpu.dimension_semantics<parallel>], iteration_bounds = array<i64: 1>, scalar_prefetch = 0 : i64, scratch_operands = 0 : i64, tpu.core_type = #tpu.core_type<tc>, window_params = [{transform_indices = @transform_0, window_bounds = array<i64: 8, 17>}, {pipeline_mode = #tpu.pipeline_mode<synchronous>, transform_indices = @transform_1, window_bounds = array<i64: 17, 3>}, {pipeline_mode = #tpu.pipeline_mode<synchronous>, transform_indices = @transform_2, window_bounds = array<i64: 1, 4>}, {transform_indices = @transform_3, window_bounds = array<i64: 8, 3>}, {transform_indices = @transform_4, window_bounds = array<i64: 8, 1>}]} {
    %c0 = arith.constant 0 : index
    %c0_0 = arith.constant 0 : index
    %0 = vector.load %arg1[%c0, %c0_0] : memref<8x17xf32, #tpu.memory_space<vmem>>, vector<8x17xf32>
    %c0_1 = arith.constant 0 : index
    %c0_2 = arith.constant 0 : index
    %1 = vector.load %arg2[%c0_1, %c0_2] : memref<17x3xf32, #tpu.memory_space<vmem>>, vector<17x3xf32>
    %c0_3 = arith.constant 0 : index
    %c0_4 = arith.constant 0 : index
    %2 = vector.load %arg3[%c0_3, %c0_4] : memref<1x4xf32, #tpu.memory_space<vmem>>, vector<1x4xf32>
    %cst = arith.constant dense<0.000000e+00> : vector<8x3xf32>
    %3 = tpu.matmul %0, %1, %cst {dimension_numbers = #tpu.dot_dimension_numbers<[1], [0], [0], [1], [0, 0, 1, 1], [], []>} : vector<8x17xf32>, vector<17x3xf32>, vector<8x3xf32> -> vector<8x3xf32>
    %c0_5 = arith.constant 0 : index
    %c0_6 = arith.constant 0 : index
    %4 = vector.load %arg4[%c0_5, %c0_6] : memref<8x3xf32, #tpu.memory_space<vmem>>, vector<8x3xf32>
    tpu.vector_store %arg4[%c0_5, %c0_6], %3 {strides = array<i32>} : memref<8x3xf32, #tpu.memory_space<vmem>>, vector<8x3xf32>,
    %5 = arith.negf %3 : vector<8x3xf32>
    %6 = math.exp %5 : vector<8x3xf32>
    %cst_7 = arith.constant 1.000000e+00 : f32
    %7 = vector.broadcast %cst_7 : f32 to vector<8x3xf32>
    %8 = arith.addf %7, %6 : vector<8x3xf32>
    %9 = arith.divf %7, %8 : vector<8x3xf32>
    %10 = vector.extract_strided_slice %2 {offsets = [0, 0], sizes = [1, 3], strides = [1, 1]} : vector<1x4xf32> to vector<1x3xf32>
    %11 = vector.extract_strided_slice %2 {offsets = [0, 3], sizes = [1, 1], strides = [1, 1]} : vector<1x4xf32> to vector<1x1xf32>
    %12 = vector.broadcast %10 : vector<1x3xf32> to vector<8x3xf32>
    %13 = arith.mulf %9, %12 : vector<8x3xf32>
    %cst_8 = arith.constant dense<0.000000e+00> : vector<8xf32>
    %14 = vector.multi_reduction <add>, %13, %cst_8 [1] : vector<8x3xf32> to vector<8xf32>
    %15 = vector.shape_cast %14 : vector<8xf32> to vector<8x1xf32>
    %16 = vector.broadcast %11 : vector<1x1xf32> to vector<8x1xf32>
    %17 = arith.addf %15, %16 : vector<8x1xf32>
    %18 = arith.negf %17 : vector<8x1xf32>
    %19 = math.exp %18 : vector<8x1xf32>
    %cst_9 = arith.constant 1.000000e+00 : f32
    %20 = vector.broadcast %cst_9 : f32 to vector<8x1xf32>
    %21 = arith.addf %20, %19 : vector<8x1xf32>
    %22 = arith.divf %20, %21 : vector<8x1xf32>
    %c0_10 = arith.constant 0 : index
    %c0_11 = arith.constant 0 : index
    %23 = vector.load %arg5[%c0_10, %c0_11] : memref<8x1xf32, #tpu.memory_space<vmem>>, vector<8x1xf32>
    tpu.vector_store %arg5[%c0_10, %c0_11], %22 {strides = array<i32>} : memref<8x1xf32, #tpu.memory_space<vmem>>, vector<8x1xf32>,
    return
  }
  func.func @transform_0(%arg0: i32) -> (i32, i32) {
    %c0_i32 = arith.constant 0 : i32
    %c0_i32_0 = arith.constant 0 : i32
    return %arg0, %c0_i32 : i32, i32
  }
  func.func @transform_1(%arg0: i32) -> (i32, i32) {
    %c0_i32 = arith.constant 0 : i32
    %c0_i32_0 = arith.constant 0 : i32
    %c0_i32_1 = arith.constant 0 : i32
    return %c0_i32, %c0_i32_0 : i32, i32
  }
  func.func @transform_2(%arg0: i32) -> (i32, i32) {
    %c0_i32 = arith.constant 0 : i32
    %c0_i32_0 = arith.constant 0 : i32
    %c0_i32_1 = arith.constant 0 : i32
    return %c0_i32, %c0_i32_0 : i32, i32
  }
  func.func @transform_3(%arg0: i32) -> (i32, i32) {
    %c0_i32 = arith.constant 0 : i32
    %c0_i32_0 = arith.constant 0 : i32
    return %arg0, %c0_i32 : i32, i32
  }
  func.func @transform_4(%arg0: i32) -> (i32, i32) {
    %c0_i32 = arith.constant 0 : i32
    %c0_i32_0 = arith.constant 0 : i32
    return %arg0, %c0_i32 : i32, i32
  }
}

</mosaic_0001>

<bundles_post_ra>
// kernel: tpu_custom_call.1
= control target key start
LH: loop header
LB: loop body
LE: loop exit
PB: predicated region body
PF: predicated region fallthrough
CT: control target
= control target key end

     0   :  { %vm25_vm0 = vcmask 1040384   ;;  %vm21_vm1 = vcmask 138240   ;;  %vm49_vm2 = vcmask 23552   ;;  %vm101_vm11 = vcmask 7168   ;;  %s174_s1 = inlined_call_operand.vmem [shape: f32[17,3], index: 1, kind: input, shape index: {}]   ;;  %s175_s0 = inlined_call_operand.vmem [shape: f32[8,17], index: 0, kind: input, shape index: {}]   ;;  %s176_s2 = inlined_call_operand.vmem [shape: f32[1,4], index: 2, kind: input, shape index: {}]   ;;  %s177_s3 = inlined_call_operand.vmem [shape: f32[8,3], index: 3, kind: output, shape index: {0}]   ;;  %s178_s4 = inlined_call_operand.vmem [shape: f32[8,1], index: 4, kind: output, shape index: {1}]  }
   0x1   :  { %v19_v0 = vld [vmem:[%s174_s1 + $0x10] sm:$0x1]  ;;  %v18_v1 = vld [vmem:[%s174_s1 + $0x8] sm:$0xff]  ;;  %v17_v2 = vld [vmem:[%s174_s1] sm:$0xff] }
   0x2   :  { %111 = vmatpush.msk.msra.mxu0 %vm25_vm0, %v19_v0  ;;  %v16_v3 = vld [vmem:[%s175_s0] sm:$0xff] }
   0x3   :  { %v116_v15 = vld [vmem:[%s176_s2] ss:$0 sm:$0xff]  ;;  %s125_s2 = smov 125  }
   0x4   :  { %43 = vmatpush.msra.mxu0 %v18_v1 }
   0x6   :  { %44 = vmatpush.msra.mxu0 %v17_v2 }
   0x7   :  { %112 = vmatmul.msk.f32.vlgmr.msra.gmra.mxu0 %vm21_vm1, %v16_v3 }
  0x84   :  { %v46_v4 = vpop.f32.mrf.mxu0 }
  0x85   :  { %v113_v5 = vmul.f32 -1.442695, %v46_v4  ;;  %50 = vst.msk [vmem:[%s177_s3] sm:$0xff] %vm49_vm2, %v46_v4 }
  0x87   :  { %117 = vpow2.f32 %v113_v5 }
  0x8d   :  { %v118_v6 = vpop.eup %117 }
  0x8e   :  { %v54_v7 = vadd.f32 1.0, %v118_v6 }
  0x90   :  { %119 = vrcp.f32 %v54_v7  ;;  %v66_v11 = vand.u32 2147483648, %v54_v7  ;;  %v64_v13 = vand.u32 2147483647, %v54_v7  ;;  %vm60_vm4 = vweird.f32 %v54_v7 }
  0x92   :  { %v67_v16 = vor.u32 1.1754944e-38, %v66_v11  ;;  %vm65_vm6 = vcmp.eq.f32.partialorder %v64_v13, 8.507059e+37 }
  0x96   :  { %v120_v8 = vpop.eup %119 }
  0x97   :  { %v56_v9 = vmul.f32 %v120_v8, %v54_v7  ;;  %vm61_vm3 = vweird.f32 %v120_v8 }
  0x98   :  { %vm62_vm5 = vmor %vm60_vm4, %vm61_vm3 }
  0x99   :  { %v57_v10 = vsub.f32 1.0, %v56_v9 }
  0x9b   :  { %v58_v12 = vmul.f32 %v120_v8, %v57_v10 }
  0x9d   :  { %v59_v14 = vadd.f32 %v120_v8, %v58_v12 }
  0x9f   :  { %v63_v17 = vsel %vm62_vm5, %v120_v8, %v59_v14 }
  0xa0   :  { %v68_v18 = vsel %vm65_vm6, %v67_v16, %v63_v17 }
  0xa1   :  { %v73_v19 = vmul.f32 %v116_v15, %v68_v18 }
  0xa3   :  { %v74_v20 = vsel %vm49_vm2, %v73_v19, 0.0 }
  0xa4   :  { %75 = vadd.xlane.f32.xlu0 %v74_v20 }
 0x117   :  { %v76_v21 = vpop.xlane.xlu0 %75 }
 0x118   :  { %v77_v22 = vadd.f32 %v116_v15, %v76_v21 }
 0x11a   :  { %v114_v23 = vmul.f32 -1.442695, %v77_v22 }
 0x11c   :  { %121 = vpow2.f32 %v114_v23 }
 0x122   :  { %v122_v24 = vpop.eup %121 }
 0x123   :  { %v81_v25 = vadd.f32 1.0, %v122_v24 }
 0x125   :  { %123 = vrcp.f32 %v81_v25  ;;  %v93_v29 = vand.u32 2147483648, %v81_v25  ;;  %v91_v31 = vand.u32 2147483647, %v81_v25  ;;  %vm87_vm8 = vweird.f32 %v81_v25 }
 0x127   :  { %v94_v33 = vor.u32 1.1754944e-38, %v93_v29  ;;  %vm92_vm10 = vcmp.eq.f32.partialorder %v91_v31, 8.507059e+37 }
 0x12b   :  { %v124_v26 = vpop.eup %123 }
 0x12c   :  { %v83_v27 = vmul.f32 %v124_v26, %v81_v25  ;;  %vm88_vm7 = vweird.f32 %v124_v26 }
 0x12d   :  { %vm89_vm9 = vmor %vm87_vm8, %vm88_vm7 }
 0x12e   :  { %v84_v28 = vsub.f32 1.0, %v83_v27 }
 0x130   :  { %v85_v30 = vmul.f32 %v124_v26, %v84_v28 }
 0x132   :  { %v86_v32 = vadd.f32 %v124_v26, %v85_v30 }
 0x134   :  { %v90_v34 = vsel %vm89_vm9, %v124_v26, %v86_v32 }
 0x135   :  { %v95_v35 = vsel %vm92_vm10, %v94_v33, %v90_v34 }
 0x136   :  { %98 = vrot.lane.b32.xlu0 %v95_v35, %s125_s2 }
 0x1a8   :  { %v99_v36 = vpop.permute.xlu0 %98 }
 0x1a9   :  { %102 = vst.msk [vmem:[%s178_s4] sm:$0xff] %vm101_vm11, %v99_v36 }

</bundles_post_ra>
